<compile_context>
chip_gen: v7x
topology: tpu7x:2x2x1
jax: 0.10.0
libtpu: 0.0.40
codegen_flags: <defaults>
</compile_context>

<pallas_src>
import numpy as np
import jax
import jax.numpy as jnp
from jax.experimental import pallas as pl
from jax.experimental.pallas import tpu as pltpu

POOL_SIZES = (1, 2, 3, 6)
BN_EPS = 1e-5


# ---------------------------------------------------------------------------
# Host-side constant construction (glue, not hot path)
# ---------------------------------------------------------------------------
def _adaptive_avg_pool_matrix(out_size, in_size):
    """(out_size, in_size): row i averages input [floor(i*I/O), ceil((i+1)*I/O))."""
    m = np.zeros((out_size, in_size), np.float32)
    for i in range(out_size):
        start = (i * in_size) // out_size
        end = -((-(i + 1) * in_size) // out_size)  # ceil
        m[i, start:end] = 1.0 / (end - start)
    return m


def _bilinear_upsample_matrix(out_size, in_size):
    """(out_size, in_size), matches F.interpolate(mode='bilinear', align_corners=False)."""
    m = np.zeros((out_size, in_size), np.float32)
    scale = in_size / out_size
    for i in range(out_size):
        src = max((i + 0.5) * scale - 0.5, 0.0)
        i0 = min(int(np.floor(src)), in_size - 1)
        frac = src - i0
        i1 = min(i0 + 1, in_size - 1)
        m[i, i0] += 1.0 - frac
        m[i, i1] += frac
    return m


def _build_constants(C, H, W, pool_sizes):
    """Pool/upsample operators, stage mask and per-channel valid-element counts.

    The pooled axis (sum of s*s = 50) is zero-padded to 128 lanes: unmasked stores and
    full-lane vregs in the kernels, numerically a no-op (padded columns of P / rows of U
    are zero and are masked out of the BN statistics).
    """
    n_stage = len(pool_sizes)
    Co = C // n_stage
    HW = H * W
    S = sum(s * s for s in pool_sizes)            # 50 for (1, 2, 3, 6)
    S_pad = int(-(-S // 128) * 128)               # -> 128
    P = np.zeros((S_pad, HW), np.float32)
    U = np.zeros((S_pad, HW), np.float32)
    mask = np.zeros((n_stage * Co, S_pad), np.float32)
    cnt = np.zeros((n_stage * Co,), np.float32)
    off = 0
    for k, s in enumerate(pool_sizes):
        Ah = _adaptive_avg_pool_matrix(s, H)
        Aw = _adaptive_avg_pool_matrix(s, W)
        P[off:off + s * s] = np.kron(Ah, Aw)                      # pooling operator
        Uh = _bilinear_upsample_matrix(H, s)
        Uw = _bilinear_upsample_matrix(W, s)
        U[off:off + s * s] = np.kron(Uh, Uw).T                    # upsample operator
        mask[k * Co:(k + 1) * Co, off:off + s * s] = 1.0
        cnt[k * Co:(k + 1) * Co] = float(s * s)
        off += s * s
    return jnp.asarray(P.T), jnp.asarray(U), jnp.asarray(mask), jnp.asarray(cnt)


def _vmem_limit_bytes():
    """Per-generation scoped-VMEM cap: ~96 MiB on 128 MiB chips (v5e/v6e), ~48 MiB on v7x."""
    cap = None
    try:
        cap = int(getattr(pltpu.get_tpu_info(), "vmem_capacity_bytes"))
    except Exception:
        cap = None
    if not cap or cap <= 0:
        cap = 64 * 1024 * 1024
    return int(min(max((cap * 3) // 4, 32 * 1024 * 1024), 100 * 1024 * 1024))


def _choose_hw_tile(HW, target):
    """Lane-dense HW tile dividing HW; prefer >= 2 steps so the axis pipelines/shards."""
    if HW % 128 != 0:
        return HW                                  # single full-extent block
    t = max(128, min(target, HW))
    t -= t % 128
    while HW % t != 0:
        t -= 128
    if t == HW and HW >= 256 and (HW // 2) % 128 == 0:
        t = HW // 2
    return t


# ---------------------------------------------------------------------------
# Kernel 1: adaptive avg-pool (chunked contraction over HW) + stacked 1x1 conv
# grid = (N, HW//hw_k); N "parallel", HW chunk "arbitrary" (VMEM accumulator)
# ---------------------------------------------------------------------------
def _pool_conv_kernel(x_ref, pt_ref, w_ref, y_ref, acc_ref):
    # x_ref: (1, C, hw_k)  pt_ref: (hw_k, S_pad)  w_ref: (CT, C)
    # y_ref: (1, CT, S_pad) f32   acc_ref: (C, S_pad) f32 scratch
    @pl.when(pl.program_id(1) == 0)
    def _():
        acc_ref[...] = jnp.zeros_like(acc_ref)

    acc_ref[...] += jnp.dot(x_ref[0], pt_ref[...], preferred_element_type=jnp.float32)

    @pl.when(pl.program_id(1) == pl.num_programs(1) - 1)
    def _():
        y_ref[0] = jnp.dot(w_ref[...], acc_ref[...].astype(w_ref.dtype),
                           preferred_element_type=jnp.float32)


# ---------------------------------------------------------------------------
# Kernel 2: bilinear upsample (matmul) + concat fold
# grid = (N, HW//hw_tile), both "parallel"; BN/ReLU/mask/cast already hoisted to glue
# ---------------------------------------------------------------------------
def _upsample_concat_kernel(x_ref, ybn_ref, u_ref, out_ref):
    # x_ref: (1, C, hw_t) x.dtype   ybn_ref: (1, CT, S_pad) mxu dtype (BN+ReLU+mask applied)
    # u_ref: (S_pad, hw_t) mxu dtype   out_ref: (1, 2C, hw_t) x.dtype
    c = x_ref.shape[1]
    up = jnp.dot(ybn_ref[0], u_ref[...], preferred_element_type=jnp.float32)  # (CT, hw_t)
    out_ref[0, :c, :] = x_ref[0]                       # passthrough half of the concat
    out_ref[0, c:, :] = up.astype(out_ref.dtype)       # pyramid half


# ---------------------------------------------------------------------------
# Wrapper
# ---------------------------------------------------------------------------
def pyramid_pooling_module(x, conv_w, gamma, beta, *, mxu_dtype=jnp.bfloat16,
                           hw_tile=None, hw_chunk=None):
    """x: (N, C, H, W). conv_w: (C, C) stacked per-stage 1x1 weights (stage-major, same
    order as POOL_SIZES); gamma/beta: (C,) stacked BN params. Returns (N, 2C, H, W)."""
    N, C, H, W = x.shape
    n_stage = len(POOL_SIZES)
    assert C % n_stage == 0, "in_channels must be divisible by the number of pyramid stages"
    assert C % 8 == 0, "in_channels must be a multiple of 8 for clean TPU sublane layout"
    Co = C // n_stage
    CT = n_stage * Co                      # == C
    HW = H * W
    assert conv_w.shape == (CT, C) and gamma.shape == (CT,) and beta.shape == (CT,), \
        "conv_w/gamma/beta must be packed stage-major in POOL_SIZES order"

    PT, U, mask, cnt = _build_constants(C, H, W, POOL_SIZES)
    S_pad = PT.shape[1]

    # MXU operands in bf16 by default (halves x/operator HBM traffic, fast MXU path);
    # accumulation stays f32 via preferred_element_type. Pass mxu_dtype=jnp.float32 to opt out.
    x_flat = x.reshape(N, C, HW)
    x_mm = x_flat.astype(mxu_dtype)
    pt_mm = PT.astype(mxu_dtype)
    u_mm = U.astype(mxu_dtype)
    w_mm = conv_w.astype(mxu_dtype)
    mm_itemsize = jnp.dtype(mxu_dtype).itemsize
    out_itemsize = jnp.dtype(x.dtype).itemsize

    vmem_limit = _vmem_limit_bytes()
    tile_target = 2048 if vmem_limit >= 80 * 1024 * 1024 else 1024

    # ---- Kernel 1: pool + conv, grid over (batch, HW chunks) ----
    if hw_chunk is None:
        hw_chunk = _choose_hw_tile(HW, tile_target)
    assert HW % hw_chunk == 0
    num_k = HW // hw_chunk
    cost1 = pl.CostEstimate(
        flops=2 * N * C * HW * S_pad + 2 * N * CT * C * S_pad,
        transcendentals=0,
        bytes_accessed=(N * C * HW + HW * S_pad + CT * C) * mm_itemsize
        + N * CT * S_pad * 4,
    )
    # TODO(synk): on v7x, single-buffer the constant-index operands (pt is re-fetched per k
    # chunk, w never) via pipeline_mode=pl.Buffered(1) to reclaim VMEM for larger x chunks.
    y = pl.pallas_call(
        _pool_conv_kernel,
        out_shape=jax.ShapeDtypeStruct((N, CT, S_pad), jnp.float32),
        grid=(N, num_k),
        in_specs=[
            pl.BlockSpec((1, C, hw_chunk), lambda n, k: (n, 0, k)),   # x[n] HW chunk
            pl.BlockSpec((hw_chunk, S_pad), lambda n, k: (k, 0)),     # pooling operator^T chunk
            pl.BlockSpec((CT, C), lambda n, k: (0, 0)),               # stacked 1x1 conv weights
        ],
        out_specs=pl.BlockSpec((1, CT, S_pad), lambda n, k: (n, 0, 0)),
        scratch_shapes=[pltpu.VMEM((C, S_pad), jnp.float32)],
        compiler_params=pltpu.CompilerParams(
            dimension_semantics=("parallel", "arbitrary"),
            vmem_limit_bytes=vmem_limit,
        ),
        cost_estimate=cost1,
    )(x_mm, pt_mm, w_mm)

    # ---- Glue: BN training-mode batch statistics + BN/ReLU/mask/cast, done ONCE ----
    # Tiny (N, CT, S_pad) tensor; two-pass mean-then-variance (numerically safe, biased var).
    denom = float(N) * cnt                                       # valid pooled elems / channel
    mean = jnp.sum(y * mask[None], axis=(0, 2)) / denom
    diff = (y - mean[None, :, None]) * mask[None]
    var = jnp.sum(diff * diff, axis=(0, 2)) / denom
    scale = gamma.astype(jnp.float32) * jax.lax.rsqrt(var + BN_EPS)
    shift = beta.astype(jnp.float32) - mean * scale
    ybn = jnp.maximum(y * scale[None, :, None] + shift[None, :, None], 0.0) * mask[None]
    ybn = ybn.astype(mxu_dtype)                                  # emitted already in MXU dtype

    # ---- Kernel 2: upsample + concat fold over lane-dense HW tiles, batched grid ----
    if hw_tile is None:
        hw_tile = _choose_hw_tile(HW, tile_target)
    assert HW % hw_tile == 0
    num_hw = HW // hw_tile
    cost2 = pl.CostEstimate(
        flops=2 * N * CT * S_pad * HW,
        transcendentals=0,
        bytes_accessed=N * C * HW * out_itemsize + N * CT * S_pad * mm_itemsize
        + S_pad * HW * mm_itemsize + N * 2 * C * HW * out_itemsize,
    )
    # TODO(synk): at production PSPNet shapes (C~2048) add a channel-tile grid axis so the
    # (1, 2C, hw_tile) output block fits v7x's 64 MiB VMEM (per-tile passthrough/pyramid branch).
    out_flat = pl.pallas_call(
        _upsample_concat_kernel,
        out_shape=jax.ShapeDtypeStruct((N, 2 * C, HW), x.dtype),
        grid=(N, num_hw),
        in_specs=[
            pl.BlockSpec((1, C, hw_tile), lambda n, j: (n, 0, j)),    # x passthrough tile
            pl.BlockSpec((1, CT, S_pad), lambda n, j: (n, 0, 0)),     # BN'd pyramid activations
            pl.BlockSpec((S_pad, hw_tile), lambda n, j: (0, j)),      # upsample operator tile
        ],
        out_specs=pl.BlockSpec((1, 2 * C, hw_tile), lambda n, j: (n, 0, j)),
        compiler_params=pltpu.CompilerParams(
            dimension_semantics=("parallel", "parallel"),
            vmem_limit_bytes=vmem_limit,
        ),
        cost_estimate=cost2,
    )(x_flat, ybn, u_mm)

    return out_flat.reshape(N, 2 * C, H, W)


# ---------------------------------------------------------------------------
# Pure-XLA reference with matching numerics (for validation only)
# ---------------------------------------------------------------------------
def _reference(x, conv_w, gamma, beta, mxu_dtype=jnp.bfloat16):
    N, C, H, W = x.shape
    PT, U, mask, cnt = _build_constants(C, H, W, POOL_SIZES)
    xf = x.reshape(N, C, H * W).astype(mxu_dtype)
    pooled = jnp.einsum("ncs,sp->ncp", xf, PT.astype(mxu_dtype),
                        preferred_element_type=jnp.float32)
    y = jnp.einsum("oc,ncp->nop", conv_w.astype(mxu_dtype), pooled.astype(mxu_dtype),
                   preferred_element_type=jnp.float32)
    denom = float(N) * cnt
    mean = jnp.sum(y * mask[None], axis=(0, 2)) / denom
    diff = (y - mean[None, :, None]) * mask[None]
    var = jnp.sum(diff * diff, axis=(0, 2)) / denom
    scale = gamma * jax.lax.rsqrt(var + BN_EPS)
    shift = beta - mean * scale
    ybn = (jnp.maximum(y * scale[None, :, None] + shift[None, :, None], 0.0)
           * mask[None]).astype(mxu_dtype)
    up = jnp.einsum("ncp,ps->ncs", ybn, U.astype(mxu_dtype),
                    preferred_element_type=jnp.float32)
    out = jnp.concatenate([x.reshape(N, C, H * W), up.astype(x.dtype)], axis=1)
    return out.reshape(N, 2 * C, H, W)


if __name__ == "__main__":
    N, C, H, W = 2, 8, 16, 16
    Co = C // len(POOL_SIZES)

    key = jax.random.PRNGKey(0)
    kx, kw = jax.random.split(key)
    x = jax.random.normal(kx, (N, C, H, W), dtype=jnp.float32)

    # Deterministic parameter init (per-stage 1x1 conv weights, no bias; BN default init).
    ws = []
    for _ in POOL_SIZES:
        kw, sub = jax.random.split(kw)
        ws.append(jax.random.normal(sub, (Co, C), dtype=jnp.float32) / np.sqrt(C))
    conv_w = jnp.concatenate(ws, axis=0)                          # (4*Co, C) == (C, C)
    gamma = jnp.ones((len(POOL_SIZES) * Co,), jnp.float32)
    beta = jnp.zeros((len(POOL_SIZES) * Co,), jnp.float32)

    out = jax.jit(pyramid_pooling_module)(x, conv_w, gamma, beta)
    jax.block_until_ready(out)
    assert out.shape == (N, 2 * C, H, W) and out.dtype == x.dtype
    assert bool(jnp.all(jnp.isfinite(out)))

    ref = jax.jit(_reference)(x, conv_w, gamma, beta)
    np.testing.assert_allclose(np.asarray(out), np.asarray(ref), atol=2e-2, rtol=2e-2)
    print("KERNEL_OK")
</pallas_src>

<mosaic_0001>
module attributes {stable_mosaic.version = 11 : i64} {
  func.func @_pool_conv_kernel(%arg0: i32, %arg1: i32, %arg2: memref<1x8x128xbf16, #tpu.memory_space<vmem>>, %arg3: memref<128x128xbf16, #tpu.memory_space<vmem>>, %arg4: memref<8x8xbf16, #tpu.memory_space<vmem>>, %arg5: memref<1x8x128xf32, #tpu.memory_space<vmem>>, %arg6: memref<8x128xf32, #tpu.memory_space<vmem>>) attributes {dimension_semantics = [#tpu.dimension_semantics<parallel>, #tpu.dimension_semantics<arbitrary>], iteration_bounds = array<i64: 2, 2>, scalar_prefetch = 0 : i64, scratch_operands = 1 : i64, tpu.core_type = #tpu.core_type<tc>, window_params = [{transform_indices = @transform_0, window_bounds = array<i64: 1, 8, 128>}, {transform_indices = @transform_1, window_bounds = array<i64: 128, 128>}, {pipeline_mode = #tpu.pipeline_mode<synchronous>, transform_indices = @transform_2, window_bounds = array<i64: 8, 8>}, {transform_indices = @transform_3, window_bounds = array<i64: 1, 8, 128>}]} {
    %c0_i32 = arith.constant 0 : i32
    %0 = arith.cmpi eq, %arg1, %c0_i32 : i32
    %1 = arith.extui %0 : i1 to i32
    %c0_i32_0 = arith.constant 0 : i32
    %2 = arith.cmpi ne, %1, %c0_i32_0 : i32
    scf.if %2 {
      %cst_10 = arith.constant 0.000000e+00 : f32
      %13 = vector.broadcast %cst_10 : f32 to vector<8x128xf32>
      %c0_11 = arith.constant 0 : index
      %c0_12 = arith.constant 0 : index
      %14 = vector.load %arg6[%c0_11, %c0_12] : memref<8x128xf32, #tpu.memory_space<vmem>>, vector<8x128xf32>
      tpu.vector_store %arg6[%c0_11, %c0_12], %13 {strides = array<i32>} : memref<8x128xf32, #tpu.memory_space<vmem>>, vector<8x128xf32>,
    } else {
    }
    %c0 = arith.constant 0 : index
    %c0_1 = arith.constant 0 : index
    %3 = vector.load %arg6[%c0, %c0_1] : memref<8x128xf32, #tpu.memory_space<vmem>>, vector<8x128xf32>
    %c0_2 = arith.constant 0 : index
    %c0_3 = arith.constant 0 : index
    %c0_4 = arith.constant 0 : index
    %4 = vector.load %arg2[%c0_2, %c0_3, %c0_4] : memref<1x8x128xbf16, #tpu.memory_space<vmem>>, vector<1x8x128xbf16>
    %5 = vector.shape_cast %4 : vector<1x8x128xbf16> to vector<8x128xbf16>
    %c0_5 = arith.constant 0 : index
    %c0_6 = arith.constant 0 : index
    %6 = vector.load %arg3[%c0_5, %c0_6] : memref<128x128xbf16, #tpu.memory_space<vmem>>, vector<128x128xbf16>
    %cst = arith.constant dense<0.000000e+00> : vector<8x128xf32>
    %7 = tpu.matmul %5, %6, %cst {dimension_numbers = #tpu.dot_dimension_numbers<[1], [0], [0], [1], [0, 0, 1, 1], [], []>} : vector<8x128xbf16>, vector<128x128xbf16>, vector<8x128xf32> -> vector<8x128xf32>
    %8 = arith.addf %3, %7 : vector<8x128xf32>
    %c0_7 = arith.constant 0 : index
    %c0_8 = arith.constant 0 : index
    %9 = vector.load %arg6[%c0_7, %c0_8] : memref<8x128xf32, #tpu.memory_space<vmem>>, vector<8x128xf32>
    tpu.vector_store %arg6[%c0_7, %c0_8], %8 {strides = array<i32>} : memref<8x128xf32, #tpu.memory_space<vmem>>, vector<8x128xf32>,
    %c1_i32 = arith.constant 1 : i32
    %10 = arith.cmpi eq, %arg1, %c1_i32 : i32
    %11 = arith.extui %10 : i1 to i32
    %c0_i32_9 = arith.constant 0 : i32
    %12 = arith.cmpi ne, %11, %c0_i32_9 : i32
    scf.if %12 {
      %c0_10 = arith.constant 0 : index
      %c0_11 = arith.constant 0 : index
      %13 = vector.load %arg4[%c0_10, %c0_11] : memref<8x8xbf16, #tpu.memory_space<vmem>>, vector<8x8xbf16>
      %c0_12 = arith.constant 0 : index
      %c0_13 = arith.constant 0 : index
      %14 = vector.load %arg6[%c0_12, %c0_13] : memref<8x128xf32, #tpu.memory_space<vmem>>, vector<8x128xf32>
      %15 = arith.truncf %14 : vector<8x128xf32> to vector<8x128xbf16>
      %cst_14 = arith.constant dense<0.000000e+00> : vector<8x128xf32>
      %16 = tpu.matmul %13, %15, %cst_14 {dimension_numbers = #tpu.dot_dimension_numbers<[1], [0], [0], [1], [0, 0, 1, 1], [], []>} : vector<8x8xbf16>, vector<8x128xbf16>, vector<8x128xf32> -> vector<8x128xf32>
      %c0_15 = arith.constant 0 : index
      %c0_16 = arith.constant 0 : index
      %c0_17 = arith.constant 0 : index
      %17 = vector.load %arg5[%c0_15, %c0_16, %c0_17] : memref<1x8x128xf32, #tpu.memory_space<vmem>>, vector<1x8x128xf32>
      %18 = vector.shape_cast %17 : vector<1x8x128xf32> to vector<8x128xf32>
      %19 = vector.shape_cast %16 : vector<8x128xf32> to vector<1x8x128xf32>
      tpu.vector_store %arg5[%c0_15, %c0_16, %c0_17], %19 {strides = array<i32>} : memref<1x8x128xf32, #tpu.memory_space<vmem>>, vector<1x8x128xf32>,
    } else {
    }
    return
  }
  func.func @transform_0(%arg0: i32, %arg1: i32) -> (i32, i32, i32) {
    %c0_i32 = arith.constant 0 : i32
    %c0_i32_0 = arith.constant 0 : i32
    return %arg0, %c0_i32, %arg1 : i32, i32, i32
  }
  func.func @transform_1(%arg0: i32, %arg1: i32) -> (i32, i32) {
    %c0_i32 = arith.constant 0 : i32
    %c0_i32_0 = arith.constant 0 : i32
    return %arg1, %c0_i32 : i32, i32
  }
  func.func @transform_2(%arg0: i32, %arg1: i32) -> (i32, i32) {
    %c0_i32 = arith.constant 0 : i32
    %c0_i32_0 = arith.constant 0 : i32
    %c0_i32_1 = arith.constant 0 : i32
    return %c0_i32, %c0_i32_0 : i32, i32
  }
  func.func @transform_3(%arg0: i32, %arg1: i32) -> (i32, i32, i32) {
    %c0_i32 = arith.constant 0 : i32
    %c0_i32_0 = arith.constant 0 : i32
    %c0_i32_1 = arith.constant 0 : i32
    return %arg0, %c0_i32, %c0_i32_0 : i32, i32, i32
  }
}

module attributes {stable_mosaic.version = 11 : i64} {
  func.func @_upsample_concat_kernel(%arg0: i32, %arg1: i32, %arg2: memref<1x8x128xf32, #tpu.memory_space<vmem>>, %arg3: memref<1x8x128xbf16, #tpu.memory_space<vmem>>, %arg4: memref<128x128xbf16, #tpu.memory_space<vmem>>, %arg5: memref<1x16x128xf32, #tpu.memory_space<vmem>>) attributes {dimension_semantics = [#tpu.dimension_semantics<parallel>, #tpu.dimension_semantics<parallel>], iteration_bounds = array<i64: 2, 2>, scalar_prefetch = 0 : i64, scratch_operands = 0 : i64, tpu.core_type = #tpu.core_type<tc>, window_params = [{transform_indices = @transform_0, window_bounds = array<i64: 1, 8, 128>}, {transform_indices = @transform_1, window_bounds = array<i64: 1, 8, 128>}, {transform_indices = @transform_2, window_bounds = array<i64: 128, 128>}, {transform_indices = @transform_3, window_bounds = array<i64: 1, 16, 128>}]} {
    %c0 = arith.constant 0 : index
    %c0_0 = arith.constant 0 : index
    %c0_1 = arith.constant 0 : index
    %0 = vector.load %arg3[%c0, %c0_0, %c0_1] : memref<1x8x128xbf16, #tpu.memory_space<vmem>>, vector<1x8x128xbf16>
    %1 = vector.shape_cast %0 : vector<1x8x128xbf16> to vector<8x128xbf16>
    %c0_2 = arith.constant 0 : index
    %c0_3 = arith.constant 0 : index
    %2 = vector.load %arg4[%c0_2, %c0_3] : memref<128x128xbf16, #tpu.memory_space<vmem>>, vector<128x128xbf16>
    %cst = arith.constant dense<0.000000e+00> : vector<8x128xf32>
    %3 = tpu.matmul %1, %2, %cst {dimension_numbers = #tpu.dot_dimension_numbers<[1], [0], [0], [1], [0, 0, 1, 1], [], []>} : vector<8x128xbf16>, vector<128x128xbf16>, vector<8x128xf32> -> vector<8x128xf32>
    %c0_4 = arith.constant 0 : index
    %c0_5 = arith.constant 0 : index
    %c0_6 = arith.constant 0 : index
    %4 = vector.load %arg2[%c0_4, %c0_5, %c0_6] : memref<1x8x128xf32, #tpu.memory_space<vmem>>, vector<1x8x128xf32>
    %5 = vector.shape_cast %4 : vector<1x8x128xf32> to vector<8x128xf32>
    %c0_7 = arith.constant 0 : index
    %c0_8 = arith.constant 0 : index
    %c0_9 = arith.constant 0 : index
    %6 = vector.load %arg5[%c0_7, %c0_8, %c0_9] : memref<1x16x128xf32, #tpu.memory_space<vmem>>, vector<1x8x128xf32>
    %7 = vector.shape_cast %6 : vector<1x8x128xf32> to vector<8x128xf32>
    %8 = vector.shape_cast %5 : vector<8x128xf32> to vector<1x8x128xf32>
    tpu.vector_store %arg5[%c0_7, %c0_8, %c0_9], %8 {strides = array<i32>} : memref<1x16x128xf32, #tpu.memory_space<vmem>>, vector<1x8x128xf32>,
    %c0_10 = arith.constant 0 : index
    %c8 = arith.constant 8 : index
    %c0_11 = arith.constant 0 : index
    %9 = vector.load %arg5[%c0_10, %c8, %c0_11] : memref<1x16x128xf32, #tpu.memory_space<vmem>>, vector<1x8x128xf32>
    %10 = vector.shape_cast %9 : vector<1x8x128xf32> to vector<8x128xf32>
    %11 = vector.shape_cast %3 : vector<8x128xf32> to vector<1x8x128xf32>
    tpu.vector_store %arg5[%c0_10, %c8, %c0_11], %11 {strides = array<i32>} : memref<1x16x128xf32, #tpu.memory_space<vmem>>, vector<1x8x128xf32>,
    return
  }
  func.func @transform_0(%arg0: i32, %arg1: i32) -> (i32, i32, i32) {
    %c0_i32 = arith.constant 0 : i32
    %c0_i32_0 = arith.constant 0 : i32
    return %arg0, %c0_i32, %arg1 : i32, i32, i32
  }
  func.func @transform_1(%arg0: i32, %arg1: i32) -> (i32, i32, i32) {
    %c0_i32 = arith.constant 0 : i32
    %c0_i32_0 = arith.constant 0 : i32
    %c0_i32_1 = arith.constant 0 : i32
    return %arg0, %c0_i32, %c0_i32_0 : i32, i32, i32
  }
  func.func @transform_2(%arg0: i32, %arg1: i32) -> (i32, i32) {
    %c0_i32 = arith.constant 0 : i32
    %c0_i32_0 = arith.constant 0 : i32
    return %c0_i32, %arg1 : i32, i32
  }
  func.func @transform_3(%arg0: i32, %arg1: i32) -> (i32, i32, i32) {
    %c0_i32 = arith.constant 0 : i32
    %c0_i32_0 = arith.constant 0 : i32
    return %arg0, %c0_i32, %arg1 : i32, i32, i32
  }
}

</mosaic_0001>

<bundles_post_ra>
// kernel: pyramid_pooling_module.2
= control target key start
LH: loop header
LB: loop body
LE: loop exit
PB: predicated region body
PF: predicated region fallthrough
CT: control target
= control target key end

     0   :  { %s644_s12 = smov 0   ;;  %s646_s13 = smov 0   ;;  %s714_s0 = inlined_call_operand.vmem [shape: bf16[2,8,256], index: 0, kind: input, shape index: {}]   ;;  %s715_s1 = inlined_call_operand.vmem [shape: bf16[256,128], index: 1, kind: input, shape index: {}]   ;;  %s716_s2 = inlined_call_operand.vmem [shape: bf16[8,8], index: 2, kind: input, shape index: {}]   ;;  %s717_s3 = inlined_call_operand.vmem [shape: f32[2,8,128], index: 3, kind: output, shape index: {}]  }
   0x1   :  { %s648_s14 = smov 0   ;;  %s650_s15 = smov 0  }
   0x2   :  { %s652_s16 = smov 0  }
   0x3 LB: > { %s22_s17 = sadd.s32 1, %s609_s14  ;;  %s25_s18 = sadd.s32 1, %s613_s15  ;;  %s617_s16 = sphi %s652_s16, %s13_s16   ;;  %s613_s15 = sphi %s650_s15, %s721_s15   ;;  %s609_s14 = sphi %s648_s14, %s720_s14   ;;  %s605_s13 = sphi %s646_s13, %s719_s13   ;;  %s601_s12 = sphi %s644_s12, %s718_s12  }
   0x4   : > { %p23_p0 = scmp.ge.s32.totalorder %s22_s17, 2  ;;  %p470_p1 = scmp.ge.s32.totalorder %s617_s16, 1 }
   0x5   : > { %p165_p2 = scmp.lt.s32.totalorder %s617_s16, 5 }
   0x6   : > { %s723_s17 = smov (%p23_p0, %s22_s17), 0  ;;  %s725_s18 = smov (!%p23_p0, %s25_s18), %s613_s15 }
   0x7   : > { %p166_p3 = pnand %p470_p1, %p165_p2  ;;  %p27_p4 = scmp.ge.s32.totalorder %s725_s18, 2 }
   0x8   : > { %p196_p5 = scmp.lt.s32.totalorder (!%p166_p3), %s605_s13, 1  ;;  %p198_p6 = scmp.lt.s32.totalorder (!%p166_p3), %s601_s12, 1 }
   0x9   : > { %s727_s18 = smov (%p27_p4, %s725_s18), 0  ;;  %169 = sbr.rel (%p166_p3) target bundleno = 505 (0x1f9), region = 32 }
   0xa   : > { %s473_s19 = sshll.u32 (!%p166_p3), %s601_s12, 4  ;;  %p476_p8 = scmp.ne.s32.totalorder (!%p166_p3), %s601_s12, 0 }
   0xb   : > { %p205_p7 = scmp.lt.s32.totalorder (!%p166_p3), %s473_s19, 31 }
  0x10   : > { %s729_s13 = smov (!%p196_p5, %s605_s13), 1  ;;  %s731_s19 = smov (!%p205_p7, %s473_s19), 31 }
  0x11   : > { %s199_s20 = scalar_select %p198_p6, %s601_s12, 1 }
  0x12   : > { %s471_s21 = sshll.u32 %s729_s13, 1  ;;  %s475_s23 = sshll.u32 %s729_s13, 3  ;;  %v619_v0 = vmov (!%p476_p8), 0.0  }
  0x13   : > { %s201_s22 = sadd.s32 %s471_s21, %s199_s20  ;;  %s682_s27 = scalar_lea.vmem %s717_s3, %s475_s23  ;;  %219 = vst [vmem:[#allocation2] sm:$0xff] (!%p476_p8), %v619_v0 }
  0x14   : > { %s472_s24 = sshll.u32 %s201_s22, 2  ;;  %s474_s4 = sshll.u32 %s731_s19, 2 }
  0x15   : > { %s687_s30 = scalar_lea.vmem %s714_s0, %s472_s24  ;;  %s208_s7 = scalar_lea.vmem %s715_s1, %s474_s4 }
  0x16   : > { %218 = sbr.rel (%p476_p8) target bundleno = 29 (0x1d), region = 36 }
  0x1d PF: > { %v571_v1 = vld [vmem:[%s208_s7] sm:$0xff]   ;;  %v620_v2 = vmov 0.0   ;;  %v572_v3 = vld [vmem:[%s208_s7 + $0x8] sm:$0xff]   ;;  %vm621_vm0 = vmmov 0   ;;  %v573_v4 = vld [vmem:[%s208_s7 + $0x10] sm:$0xff]   ;;  %p485_p9 = scmp.ne.s32.totalorder %s601_s12, 1 }
  0x1e   : > { %500 = vmatprep.subr.bf16.mxu0 %v620_v2  ;;  %516 = vmatprep.mubr.msk.bf16.mxu0 %vm621_vm0, %v620_v2  ;;  %v574_v5 = vld [vmem:[%s208_s7 + $0x18] sm:$0xff]   ;;  %v575_v6 = vld [vmem:[%s208_s7 + $0x20] sm:$0xff]   ;;  %v576_v7 = vld [vmem:[%s208_s7 + $0x28] sm:$0xff]   ;;  %vm339_vm1 = vcmask (!%p485_p9), 1043456   ;;  %v622_v18 = vmov (!%p485_p9), 0.0   ;;  %vm623_vm2 = vmmov (!%p485_p9), 0  }
  0x1f   : > { %501 = vmatpush3.bf16.msra.mxu0 %v571_v1  ;;  %v577_v8 = vld [vmem:[%s208_s7 + $0x30] sm:$0xff]   ;;  %v578_v9 = vld [vmem:[%s208_s7 + $0x38] sm:$0xff]   ;;  %v221_v10 = vld [vmem:[%s687_s30] sm:$0xf]  ;;  %vm335_vm3 = vcmask (!%p485_p9), 64512  }
  0x20   : > { %502 = vmatprep.subr.bf16.mxu0 %v620_v2  ;;  %v220_v11 = vld [vmem:[#allocation2] sm:$0xff] }
  0x21   : > { %v332_v21 = vld [vmem:[%s716_s2] sm:$0xf] (!%p485_p9) }
  0x23   : > { %503 = vmatpush3.bf16.msra.mxu0 %v572_v3 }
  0x24   : > { %504 = vmatprep.subr.bf16.mxu0 %v620_v2 }
  0x27   : > { %505 = vmatpush3.bf16.msra.mxu0 %v573_v4 }
  0x28   : > { %506 = vmatprep.subr.bf16.mxu0 %v620_v2 }
  0x2b   : > { %507 = vmatpush3.bf16.msra.mxu0 %v574_v5 }
  0x2c   : > { %508 = vmatprep.subr.bf16.mxu0 %v620_v2 }
  0x2f   : > { %509 = vmatpush3.bf16.msra.mxu0 %v575_v6 }
  0x30   : > { %510 = vmatprep.subr.bf16.mxu0 %v620_v2 }
  0x33   : > { %511 = vmatpush3.bf16.msra.mxu0 %v576_v7 }
  0x34   : > { %512 = vmatprep.subr.bf16.mxu0 %v620_v2 }
  0x37   : > { %513 = vmatpush3.bf16.msra.mxu0 %v577_v8 }
  0x38   : > { %514 = vmatprep.subr.bf16.mxu0 %v620_v2 }
  0x3b   : > { %515 = vmatpush3.bf16.msra.mxu0 %v578_v9 }
  0x3c   : > { %520 = vmatprep.subr.bf16.mxu0 (!%p485_p9), %v622_v18 }
  0x3e   : > { %517 = vmatmul.mubr.bf16.vlgmr.msra.gmra.mrb[0].mxu0 %v221_v10 }
  0x3f   : > { %522 = vmatprep.mubr.msk.bf16.mxu0 (!%p485_p9), %vm623_vm2, %v622_v18 }
 0x10e   : > { %331 = sbr.rel (%p485_p9) target bundleno = 505 (0x1f9), region = 40 }
 0x111   : > { %v320_v12 = vpop.f32.mrb[0].mxu0 }
 0x112   : > { %v326_v13 = vadd.f32 %v320_v12, %v220_v11  ;;  %v518_v14 = vpop.f32.mrb[1].mxu0 }
 0x113   : > { %v323_v15 = vpop.f32.mrb[2].mxu0 }
 0x114   : > { %327 = vst [vmem:[#allocation2] sm:$0xff] %v326_v13  ;;  %v519_v16 = vpop.f32.mrb[3].mxu0 }
 0x11b   : > { %v333_v17 = vld [vmem:[#allocation2] sm:$0xff] }
 0x11c   : > { %v334_v19 = vpack.c.bf16 %v333_v17, %v333_v17 }
 0x11e   : > { %v341_v20 = vsel %vm339_vm1, %v334_v19, 0 }
 0x11f   : > { %521 = vmatpush3.bf16.msra.mxu0 %v341_v20 }
 0x122   : > { %523 = vmatmul.mubr.msk.bf16.vlgmr.msra.gmra.mrb[0].mxu0 %vm335_vm3, %v332_v21 }
 0x1f5   : > { %v377_v22 = vpop.f32.mrb[0].mxu0 }
 0x1f6   : > { %383 = vst [vmem:[%s682_s27] sm:$0xff] %v377_v22  ;;  %v524_v23 = vpop.f32.mrb[1].mxu0 }
 0x1f7   : > { %v380_v24 = vpop.f32.mrb[2].mxu0 }
 0x1f8   : > { %v525_v25 = vpop.f32.mrb[3].mxu0 }
 0x1f9 PF: > { %s13_s16 = sadd.s32 1, %s617_s16   ;;  %s718_s12 = smov %s609_s14 }
 0x1fa   : > { %p10_p10 = scmp.ge.s32.totalorder %s13_s16, 6   ;;  %s719_s13 = smov %s613_s15 }
 0x1fb   : > { %s720_s14 = smov %s723_s17  ;;  %s721_s15 = smov %s727_s18 }
 0x1fc   :  { %12 = sbr.rel (!%p10_p10) target bundleno = 3 (0x3), region = 73 }

// kernel: pyramid_pooling_module.3
= control target key start
LH: loop header
LB: loop body
LE: loop exit
PB: predicated region body
PF: predicated region fallthrough
CT: control target
= control target key end

     0   :  { %s960_s0 = inlined_call_operand.vmem [shape: f32[2,8,256], index: 0, kind: input, shape index: {}]   ;;  %s961_s1 = inlined_call_operand.vmem [shape: bf16[2,8,128], index: 1, kind: input, shape index: {}]   ;;  %s962_s2 = inlined_call_operand.vmem [shape: bf16[128,256], index: 2, kind: input, shape index: {}]   ;;  %s963_s3 = inlined_call_operand.vmem [shape: f32[2,16,256], index: 3, kind: output, shape index: {}]  }
   0x1   :  { %964 = sst [smem:[#allocation4_spill]] %s962_s2 }
   0x2   :  { %s814_s12 = smov 0   ;;  %s816_s13 = smov 0  }
   0x3   :  { %s818_s14 = smov 0   ;;  %s820_s15 = smov 0  }
   0x4   :  { %s822_s16 = smov 0   ;;  %s824_s17 = smov 0  }
   0x5   :  { %s826_s18 = smov 0   ;;  %s828_s19 = smov 0  }
   0x6   :  { %s830_s20 = smov 0  }
   0x7 LB: > { %s584_s21 = sadd.s32 4294967295, %s790_s20   ;;  %s22_s22 = sadd.s32 1, %s782_s18  ;;  %s790_s20 = sphi %s830_s20, %s13_s20   ;;  %s786_s19 = sphi %s828_s19, %s974_s19   ;;  %s782_s18 = sphi %s826_s18, %s973_s18   ;;  %s778_s17 = sphi %s824_s17, %s972_s17   ;;  %s774_s16 = sphi %s822_s16, %s971_s16   ;;  %s770_s15 = sphi %s820_s15, %s970_s15   ;;  %s766_s14 = sphi %s818_s14, %s969_s14   ;;  %s762_s13 = sphi %s816_s13, %s968_s13   ;;  %s758_s12 = sphi %s814_s12, %s967_s12  }
   0x8   : > { %p23_p0 = scmp.ge.s32.totalorder %s22_s22, 2  ;;  %s25_s23 = sadd.s32 1, %s786_s19 }
   0x9   : > { %s86_s24 = sadd.s32 1, %s770_s15  ;;  %p93_p1 = scmp.ne.s32.totalorder %s770_s15, %s766_s14 }
   0xa   : > { %s976_s22 = smov (%p23_p0, %s22_s22), 0  ;;  %s978_s23 = smov (!%p23_p0, %s25_s23), %s786_s19 }
   0xb   : > { %s83_s25 = ssub.s32 %s782_s18, %s976_s22  ;;  %p94_p2 = scmp.eq.s32.totalorder %s790_s20, 0 }
   0xc   : > { %p27_p3 = scmp.ge.s32.totalorder %s978_s23, 2  ;;  %p84_p4 = scmp.eq.s32.totalorder %s83_s25, 0 }
   0xd   : > { %p95_p5 = por %p94_p2, %p93_p1  ;;  %s114_s26 = sadd.s32 1, %s762_s13 }
   0xe   : > { %s980_s23 = smov (%p27_p3, %s978_s23), 0  ;;  %p124_p6 = scmp.ne.s32.totalorder %s762_s13, %s758_s12 }
   0xf   : > { %s875_s27 = scalar_select %p84_p4, %s770_s15, %s86_s24  }
  0x10   : > { %s109_s28 = ssub.s32 %s786_s19, %s980_s23  ;;  %p125_p7 = scmp.eq.s32.totalorder %s584_s21, 3 }
  0x11   : > { %s111_s29 = sor.u32 %s109_s28, %s83_s25  ;;  %p587_p10 = scmp.ge.s32.totalorder %s790_s20, 4 }
  0x12   : > { %p112_p8 = scmp.eq.s32.totalorder %s111_s29, 0  ;;  %p881_p9 = por %p125_p7, %p124_p6 }
  0x13   : > { %147 = sbr.rel (%p587_p10) target bundleno = 46 (0x2e), region = 16 }
  0x14   : > { %s886_s4 = scalar_select %p112_p8, %s762_s13, %s114_s26  }
  0x1a   : > { %168 = sbr.rel (!%p95_p5) target bundleno = 46 (0x2e), region = 28  ;;  %s170_s5 = sand.u32 (%p95_p5), 1, %s770_s15  }
  0x1b   : > { %s589_s6 = sshll.u32 (%p95_p5), %s782_s18, 2  ;;  %s588_s7 = sshll.u32 (%p95_p5), %s170_s5, 6 }
  0x1c   : > { %s966_s2 = sld [smem:[#allocation4_spill]] (%p95_p5)  ;;  %s172_s11 = scalar_lea.vmem (%p95_p5), [#allocation2], %s588_s7 }
  0x22   : > { %s894_s10 = scalar_lea.vmem %s966_s2, %s589_s6 }
  0x23   : > { %v190_v0 = vld [vmem:[%s894_s10] sm:$0xf]  ;;  %v192_v1 = vld [vmem:[%s894_s10 + $0x8] sm:$0xf]  ;;  %v194_v2 = vld [vmem:[%s894_s10 + $0x10] sm:$0xf] }
  0x24   : > { %191 = vst [vmem:[%s172_s11] sm:$0xf] %v190_v0  ;;  %193 = vst [vmem:[%s172_s11 + $0x4] sm:$0xf] %v192_v1  ;;  %v196_v3 = vld [vmem:[%s894_s10 + $0x18] sm:$0xf] }
  0x25   : > { %v198_v4 = vld [vmem:[%s894_s10 + $0x20] sm:$0xf]  ;;  %195 = vst [vmem:[%s172_s11 + $0x8] sm:$0xf] %v194_v2  ;;  %197 = vst [vmem:[%s172_s11 + $0xc] sm:$0xf] %v196_v3 }
  0x26   : > { %199 = vst [vmem:[%s172_s11 + $0x10] sm:$0xf] %v198_v4  ;;  %v200_v5 = vld [vmem:[%s894_s10 + $0x28] sm:$0xf]  ;;  %v202_v6 = vld [vmem:[%s894_s10 + $0x30] sm:$0xf] }
  0x27   : > { %v204_v7 = vld [vmem:[%s894_s10 + $0x38] sm:$0xf]  ;;  %201 = vst [vmem:[%s172_s11 + $0x14] sm:$0xf] %v200_v5  ;;  %203 = vst [vmem:[%s172_s11 + $0x18] sm:$0xf] %v202_v6 }
  0x28   : > { %205 = vst [vmem:[%s172_s11 + $0x1c] sm:$0xf] %v204_v7  ;;  %v206_v8 = vld [vmem:[%s894_s10 + $0x40] sm:$0xf]  ;;  %v208_v9 = vld [vmem:[%s894_s10 + $0x48] sm:$0xf] }
  0x29   : > { %v210_v10 = vld [vmem:[%s894_s10 + $0x50] sm:$0xf]  ;;  %207 = vst [vmem:[%s172_s11 + $0x20] sm:$0xf] %v206_v8  ;;  %209 = vst [vmem:[%s172_s11 + $0x24] sm:$0xf] %v208_v9 }
  0x2a   : > { %211 = vst [vmem:[%s172_s11 + $0x28] sm:$0xf] %v210_v10  ;;  %v212_v11 = vld [vmem:[%s894_s10 + $0x58] sm:$0xf]  ;;  %v214_v12 = vld [vmem:[%s894_s10 + $0x60] sm:$0xf] }
  0x2b   : > { %v216_v13 = vld [vmem:[%s894_s10 + $0x68] sm:$0xf]  ;;  %213 = vst [vmem:[%s172_s11 + $0x2c] sm:$0xf] %v212_v11  ;;  %215 = vst [vmem:[%s172_s11 + $0x30] sm:$0xf] %v214_v12 }
  0x2c   : > { %217 = vst [vmem:[%s172_s11 + $0x34] sm:$0xf] %v216_v13  ;;  %v218_v14 = vld [vmem:[%s894_s10 + $0x70] sm:$0xf]  ;;  %v220_v15 = vld [vmem:[%s894_s10 + $0x78] sm:$0xf] }
  0x2d   : > { %219 = vst [vmem:[%s172_s11 + $0x38] sm:$0xf] %v218_v14  ;;  %221 = vst [vmem:[%s172_s11 + $0x3c] sm:$0xf] %v220_v15 }
  0x2e PF: > { %p590_p11 = scmp.ge.s32.totalorder %s790_s20, 1  ;;  %p275_p12 = scmp.lt.s32.totalorder %s790_s20, 5 }
  0x30   : > { %p276_p13 = pnand %p590_p11, %p275_p12 }
  0x31   : > { %s282_s21 = sand.u32 (!%p276_p13), 1, %s766_s14   ;;  %v792_v16 = vmov (!%p276_p13), 0.0   ;;  %vm793_vm0 = vmmov (!%p276_p13), 0   ;;  %p316_p0 = scmp.lt.s32.totalorder (!%p276_p13), %s778_s17, 1 }
  0x32   : > { %279 = sbr.rel (%p276_p13) target bundleno = 305 (0x131), region = 69  ;;  %618 = vmatprep.subr.bf16.mxu0 (!%p276_p13), %v792_v16  ;;  %s591_s24 = sshll.u32 (!%p276_p13), %s282_s21, 6  ;;  %634 = vmatprep.mubr.msk.bf16.mxu0 (!%p276_p13), %vm793_vm0, %v792_v16 }
  0x33   : > { %s284_s25 = scalar_lea.vmem (!%p276_p13), [#allocation2], %s591_s24  ;;  %p318_p1 = scmp.lt.s32.totalorder (!%p276_p13), %s774_s16, 1 }
  0x34   : > { %v712_v17 = vld [vmem:[%s284_s25] sm:$0xff] (!%p276_p13)   ;;  %v713_v18 = vld [vmem:[%s284_s25 + $0x8] sm:$0xff] (!%p276_p13)   ;;  %v714_v19 = vld [vmem:[%s284_s25 + $0x10] sm:$0xff] (!%p276_p13)   ;;  %s313_s9 = sand.u32 (!%p276_p13), 1, %s758_s12  }
  0x35   : > { %619 = vmatpush3.bf16.msra.mxu0 (!%p276_p13), %v712_v17  ;;  %v715_v20 = vld [vmem:[%s284_s25 + $0x18] sm:$0xff] (!%p276_p13)   ;;  %v716_v21 = vld [vmem:[%s284_s25 + $0x20] sm:$0xff] (!%p276_p13)   ;;  %v717_v22 = vld [vmem:[%s284_s25 + $0x28] sm:$0xff] (!%p276_p13)   ;;  %s592_s11 = sshll.u32 (!%p276_p13), %s313_s9, 4 }
  0x36   : > { %620 = vmatprep.subr.bf16.mxu0 (!%p276_p13), %v792_v16  ;;  %v718_v23 = vld [vmem:[%s284_s25 + $0x30] sm:$0xff] (!%p276_p13)   ;;  %v719_v24 = vld [vmem:[%s284_s25 + $0x38] sm:$0xff] (!%p276_p13)   ;;  %s315_s25 = scalar_lea.vmem (!%p276_p13), [#allocation3], %s592_s11 }
  0x39   : > { %621 = vmatpush3.bf16.msra.mxu0 %v713_v18  ;;  %s317_s14 = scalar_select %p316_p0, %s778_s17, 1 }
  0x3a   : > { %622 = vmatprep.subr.bf16.mxu0 %v792_v16  ;;  %s319_s6 = scalar_select %p318_p1, %s774_s16, 1 }
  0x3b   : > { %s595_s26 = sshll.u32 %s317_s14, 2  ;;  %s593_s7 = sshll.u32 %s317_s14, 1 }
  0x3c   : > { %s327_s5 = scalar_lea.vmem %s961_s1, %s595_s26  ;;  %s321_s8 = sadd.s32 %s593_s7, %s319_s6 }
  0x3d   : > { %623 = vmatpush3.bf16.msra.mxu0 %v714_v19  ;;  %v329_v25 = vld [vmem:[%s327_s5] sm:$0xf]  ;;  %s594_s10 = sshll.u32 %s321_s8, 3  ;;  %s605_s12 = sshll.u32 (%p881_p9), %s778_s17, 2 }
  0x3e   : > { %624 = vmatprep.subr.bf16.mxu0 %v792_v16  ;;  %s323_s2 = scalar_lea.vmem %s960_s0, %s594_s10  ;;  %s445_s14 = sadd.s32 (%p881_p9), %s774_s16, %s605_s12 }
  0x3f   : > { %v434_v26 = vld [vmem:[%s323_s2] sm:$0xff]  ;;  %s606_s26 = sshll.u32 (%p881_p9), %s445_s14, 3 }
  0x40   : > { %435 = vst [vmem:[%s315_s25] sm:$0xff] %v434_v26  ;;  %s447_s2 = scalar_lea.vmem (%p881_p9), %s963_s3, %s606_s26 }
  0x41   : > { %625 = vmatpush3.bf16.msra.mxu0 %v715_v20 }
  0x42   : > { %626 = vmatprep.subr.bf16.mxu0 %v792_v16 }
  0x45   : > { %627 = vmatpush3.bf16.msra.mxu0 %v716_v21 }
  0x46   : > { %628 = vmatprep.subr.bf16.mxu0 %v792_v16 }
  0x47   : > { %v477_v31 = vld [vmem:[%s315_s25] sm:$0xff] (%p881_p9) }
  0x48   : > { %478 = vst [vmem:[%s447_s2] sm:$0xff] (%p881_p9), %v477_v31 }
  0x49   : > { %629 = vmatpush3.bf16.msra.mxu0 %v717_v22 }
  0x4a   : > { %630 = vmatprep.subr.bf16.mxu0 %v792_v16 }
  0x4d   : > { %631 = vmatpush3.bf16.msra.mxu0 %v718_v23 }
  0x4e   : > { %632 = vmatprep.subr.bf16.mxu0 %v792_v16 }
  0x51   : > { %633 = vmatpush3.bf16.msra.mxu0 %v719_v24 }
  0x54   : > { %635 = vmatmul.mubr.bf16.vlgmr.msra.gmra.mrb[0].mxu0 %v329_v25 }
 0x124   : > { %443 = sbr.rel (!%p881_p9) target bundleno = 305 (0x131), region = 77 }
 0x127   : > { %v428_v27 = vpop.f32.mrb[0].mxu0 }
 0x128   : > { %436 = vst [vmem:[%s315_s25 + $0x8] sm:$0xff] %v428_v27  ;;  %v636_v28 = vpop.f32.mrb[1].mxu0 }
 0x129   : > { %v431_v29 = vpop.f32.mrb[2].mxu0 }
 0x12a   : > { %v637_v30 = vpop.f32.mrb[3].mxu0 }
 0x12f   : > { %v479_v32 = vld [vmem:[%s315_s25 + $0x8] sm:$0xff] }
 0x130   : > { %480 = vst [vmem:[%s447_s2 + $0x10] sm:$0xff] %v479_v32 }
 0x131 PF: > { %s13_s20 = sadd.s32 1, %s790_s20   ;;  %s967_s12 = smov %s762_s13 }
 0x132   : > { %p10_p2 = scmp.ge.s32.totalorder %s13_s20, 6   ;;  %s968_s13 = smov %s886_s4 }
 0x133   : > { %s969_s14 = smov %s770_s15  ;;  %s970_s15 = smov %s875_s27 }
 0x134   : > { %s971_s16 = smov %s782_s18  ;;  %s972_s17 = smov %s786_s19 }
 0x135   : > { %s973_s18 = smov %s976_s22  ;;  %s974_s19 = smov %s980_s23 }
 0x136   :  { %12 = sbr.rel (!%p10_p2) target bundleno = 7 (0x7), region = 152 }

</bundles_post_ra>
